<compile_context>
chip_gen: v6e
topology: v6e:2x2x1
jax: 0.10.0
libtpu: 0.0.40
codegen_flags: <defaults>
</compile_context>

<pallas_src>
import math
import functools

import jax
import jax.numpy as jnp
from jax import lax
from jax.experimental import pallas as pl
from jax.experimental.pallas import tpu as pltpu


def _round_up(x, m):
    return (x + m - 1) // m * m


# Keep the one-hot MXU relation gather hidden under the entity-stream DMA even
# on v5e's slow MXU/HBM (cost ratio ~ R_pad / 500 there).
_FUSE_REL_MAX_RPAD = 512


def _vmem_budget():
    """Returns (tile budget bytes, scoped vmem limit bytes) per TPU generation."""
    try:
        cap = pltpu.get_tpu_info().vmem_capacity_bytes
    except Exception:
        cap = 64 << 20                       # conservative (v7x-like) fallback
    if cap >= (100 << 20):                   # v5e / v6e: 128 MiB physical VMEM
        return 48 << 20, 64 << 20
    return 22 << 20, 32 << 20                # v7x: 64 MiB per TensorCore


def _choose_block_b(batch, per_row_bytes, budget_bytes):
    """Batch tile: as big as the VMEM budget allows, >=2 grid steps for
    batch >= 256 (v7x megacore), 128-aligned for lane-dense output stores."""
    max_rows = max(8, budget_bytes // per_row_bytes)
    max_rows = (max_rows // 128) * 128 if max_rows >= 128 else (max_rows // 8) * 8
    if batch <= max_rows and batch < 256:
        return _round_up(batch, 8)           # a single sublane-aligned tile
    n_steps = max(2, -(-batch // max(max_rows, 128)))
    block_b = _round_up(-(-batch // n_steps), 128)
    # TODO(synk): for extreme Dp (>~16K) even a 128-row block can exceed the
    # VMEM budget; such configs need a column-split (two-level) kernel.
    return min(block_b, max(max_rows, 128))


# ---------------------------------------------------------------------------
# Kernels
# ---------------------------------------------------------------------------
def _rotate_fused_kernel(ridx_ref, hre_ref, him_ref, tre_ref, tim_ref,
                         rcos_ref, rsin_ref, o_ref, *, gamma):
    """Fused relation gather: one-hot @ VMEM-resident cos/sin tables on the MXU."""
    f32 = jnp.float32
    re_h = hre_ref[...].astype(f32)          # (tb, Dp)
    im_h = him_ref[...].astype(f32)
    re_t = tre_ref[...].astype(f32)
    im_t = tim_ref[...].astype(f32)

    tb = re_h.shape[0]
    r_pad = rcos_ref.shape[0]
    # 0/1 are exact in bf16, so dot(one_hot, table) reproduces the stored bf16
    # table rows exactly (single nonzero term per output, f32 accumulation).
    iota = lax.broadcasted_iota(jnp.int32, (tb, r_pad), 1)
    one_hot = (iota == ridx_ref[...]).astype(rcos_ref.dtype)        # (tb, R_pad)
    re_r = jnp.dot(one_hot, rcos_ref[...], preferred_element_type=f32)
    im_r = jnp.dot(one_hot, rsin_ref[...], preferred_element_type=f32)

    re_s = re_h * re_r - im_h * im_r - re_t
    im_s = re_h * im_r + im_h * re_r - im_t
    # stack([re, im]).norm(dim=0) == sqrt(re^2 + im^2) elementwise
    dist = jnp.sqrt(re_s * re_s + im_s * im_s)                      # (tb, Dp)
    o_ref[...] = (gamma - jnp.sum(dist, axis=-1))[None, :]          # (1, tb)


def _rotate_streamed_kernel(hre_ref, him_ref, rcos_ref, rsin_ref,
                            tre_ref, tim_ref, o_ref, *, gamma):
    """Fallback: relation cos/sin pre-gathered by XLA and streamed like entities."""
    f32 = jnp.float32
    re_h = hre_ref[...].astype(f32)
    im_h = him_ref[...].astype(f32)
    re_r = rcos_ref[...].astype(f32)
    im_r = rsin_ref[...].astype(f32)
    re_t = tre_ref[...].astype(f32)
    im_t = tim_ref[...].astype(f32)
    re_s = re_h * re_r - im_h * im_r - re_t
    im_s = re_h * im_r + im_h * re_r - im_t
    dist = jnp.sqrt(re_s * re_s + im_s * im_s)
    o_ref[...] = (gamma - jnp.sum(dist, axis=-1))[None, :]


# ---------------------------------------------------------------------------
# Wrapper
# ---------------------------------------------------------------------------
def rotate_forward(ent_re, ent_im, rel_cos, rel_sin, h_idx, r_idx, t_idx, *, gamma):
    """ent_*: (E, Dp) lane-padded entity halves (bf16/f32); rel_*: (R_pad, Dp)
    precomputed cos/sin tables.  Returns (B,) f32 scores."""
    B = int(h_idx.shape[0])
    Dp = ent_re.shape[1]
    R_pad = rel_cos.shape[0]
    ent_b = ent_re.dtype.itemsize
    rel_b = rel_cos.dtype.itemsize

    budget, vmem_limit = _vmem_budget()
    fuse = (rel_cos.dtype == jnp.bfloat16
            and R_pad <= _FUSE_REL_MAX_RPAD
            and 2 * (2 * R_pad * Dp * rel_b) <= budget // 3)
    if fuse:
        table_foot = 2 * (2 * R_pad * Dp * rel_b)            # double-buffered tables
        per_row = 2 * (4 * Dp * ent_b + 8) + 32 * Dp + 2 * R_pad
        budget_rows = max(budget - table_foot, budget // 4)
    else:
        per_row = 2 * (4 * Dp * ent_b + 2 * Dp * rel_b) + 32 * Dp
        budget_rows = budget

    block_b = _choose_block_b(B, per_row, budget_rows)
    B_pad = _round_up(B, block_b)

    # Pad the O(B) int32 index vectors (free) instead of the gathered arrays.
    def pad_idx(ix):
        ix = ix.astype(jnp.int32)
        return ix if B_pad == B else jnp.pad(ix, (0, B_pad - B))

    h_idx, r_idx, t_idx = pad_idx(h_idx), pad_idx(r_idx), pad_idx(t_idx)

    # Entity gathers stay as plain-JAX glue (rows read once by the kernel).
    # TODO(synk): fuse them via scalar-prefetched indices + manual row DMAs
    # from HBM (memory_space=pl.ANY) once Dp is large enough (>=512) for
    # efficient per-row descriptors.
    h_re = jnp.take(ent_re, h_idx, axis=0)                    # (B_pad, Dp)
    h_im = jnp.take(ent_im, h_idx, axis=0)
    t_re = jnp.take(ent_re, t_idx, axis=0)
    t_im = jnp.take(ent_im, t_idx, axis=0)

    row_spec = pl.BlockSpec((block_b, Dp), lambda i: (i, 0))
    out_spec = pl.BlockSpec((1, block_b), lambda i: (0, i))   # lane-dense output
    params = pltpu.CompilerParams(
        dimension_semantics=("parallel",),
        vmem_limit_bytes=vmem_limit,
    )

    if fuse:
        kern = functools.partial(_rotate_fused_kernel, gamma=float(gamma))
        tab_spec = pl.BlockSpec((R_pad, Dp), lambda i: (0, 0))   # VMEM-resident
        in_specs = [pl.BlockSpec((block_b, 1), lambda i: (i, 0)),
                    row_spec, row_spec, row_spec, row_spec,
                    tab_spec, tab_spec]
        args = (r_idx[:, None], h_re, h_im, t_re, t_im, rel_cos, rel_sin)
    else:
        kern = functools.partial(_rotate_streamed_kernel, gamma=float(gamma))
        r_cos = jnp.take(rel_cos, r_idx, axis=0)
        r_sin = jnp.take(rel_sin, r_idx, axis=0)
        in_specs = [row_spec] * 6
        args = (h_re, h_im, r_cos, r_sin, t_re, t_im)

    out = pl.pallas_call(
        kern,
        out_shape=jax.ShapeDtypeStruct((1, B_pad), jnp.float32),
        grid_spec=pltpu.PrefetchScalarGridSpec(
            num_scalar_prefetch=0,
            grid=(B_pad // block_b,),
            in_specs=in_specs,
            out_specs=out_spec,
        ),
        compiler_params=params,
    )(*args)
    return out[0, :B]                                          # (B,)


# ---------------------------------------------------------------------------
# Model
# ---------------------------------------------------------------------------
class RotatEModelJAX:
    """Deterministic JAX re-implementation of RotatEModel's forward pass."""

    def __init__(self, num_entities, num_relations, embedding_dim, gamma,
                 key=jax.random.PRNGKey(0), table_dtype=jnp.bfloat16):
        self.embedding_dim = embedding_dim
        self.gamma = float(gamma)
        self.epsilon = 2.0
        k_ent, k_rel = jax.random.split(key)
        # nn.init.uniform_(weight, a=-epsilon, b=epsilon), kept in f32 as the
        # master copy (mirrors the PyTorch parameters).
        self.entity_embeddings = jax.random.uniform(
            k_ent, (num_entities, embedding_dim * 2),
            minval=-self.epsilon, maxval=self.epsilon, dtype=jnp.float32)
        self.relation_embeddings = jax.random.uniform(
            k_rel, (num_relations, embedding_dim),
            minval=-self.epsilon, maxval=self.epsilon, dtype=jnp.float32)

        # ---- kernel-side precomputed, lane-aligned tables -------------------
        # TODO(synk): these derived tables are frozen-inference only; recompute
        # them if entity_embeddings / relation_embeddings are ever updated.
        D = embedding_dim
        Dp = _round_up(D, 128)
        pad = Dp - D

        # bf16 storage halves streamed HBM bytes; padded entity lanes are zero
        # so their |score| contribution is exactly 0.  (Accepted precision
        # tradeoff vs the f32 PyTorch reference; pass table_dtype=jnp.float32
        # for bit-near parity at 2x bandwidth.)
        self._ent_re = jnp.pad(self.entity_embeddings[:, :D],
                               ((0, 0), (0, pad))).astype(table_dtype)
        self._ent_im = jnp.pad(self.entity_embeddings[:, D:],
                               ((0, 0), (0, pad))).astype(table_dtype)

        # Precomputed cos/sin phase tables (no trig in the kernel).  Relation
        # axis padded to a 128 multiple so the whole table sits in VMEM and is
        # gathered on the MXU via a one-hot matmul.
        R_pad = _round_up(num_relations, 128)
        phase = self.relation_embeddings / (D / math.pi)
        cos_t = jnp.pad(jnp.cos(phase),
                        ((0, R_pad - num_relations), (0, pad)),
                        constant_values=1.0)                   # cos(0)
        sin_t = jnp.pad(jnp.sin(phase),
                        ((0, R_pad - num_relations), (0, pad)),
                        constant_values=0.0)                   # sin(0)
        self._rel_cos = cos_t.astype(table_dtype)
        self._rel_sin = sin_t.astype(table_dtype)

    def __call__(self, h_idx, r_idx, t_idx):
        return rotate_forward(self._ent_re, self._ent_im,
                              self._rel_cos, self._rel_sin,
                              h_idx, r_idx, t_idx, gamma=self.gamma)


# ---------------------------------------------------------------------------
# References
# ---------------------------------------------------------------------------
def _reference_quantized(model, h_idx, r_idx, t_idx):
    """Pure-JAX reference using exactly the (bf16-stored) tables the kernel reads."""
    D = model.embedding_dim
    f32 = jnp.float32
    re_h = jnp.take(model._ent_re, h_idx, axis=0)[:, :D].astype(f32)
    im_h = jnp.take(model._ent_im, h_idx, axis=0)[:, :D].astype(f32)
    re_t = jnp.take(model._ent_re, t_idx, axis=0)[:, :D].astype(f32)
    im_t = jnp.take(model._ent_im, t_idx, axis=0)[:, :D].astype(f32)
    re_r = jnp.take(model._rel_cos, r_idx, axis=0)[:, :D].astype(f32)
    im_r = jnp.take(model._rel_sin, r_idx, axis=0)[:, :D].astype(f32)
    re_s = re_h * re_r - im_h * im_r - re_t
    im_s = re_h * im_r + im_h * re_r - im_t
    return model.gamma - jnp.sum(jnp.sqrt(re_s ** 2 + im_s ** 2), axis=-1)


def _reference_f32(model, h_idx, r_idx, t_idx):
    """Pure-JAX reference mirroring the PyTorch forward bit-for-bit in f32."""
    D = model.embedding_dim
    h = jnp.take(model.entity_embeddings, h_idx, axis=0)
    r = jnp.take(model.relation_embeddings, r_idx, axis=0)
    t = jnp.take(model.entity_embeddings, t_idx, axis=0)
    re_h, im_h = h[:, :D], h[:, D:]
    re_t, im_t = t[:, :D], t[:, D:]
    phase = r / (D / math.pi)
    re_r, im_r = jnp.cos(phase), jnp.sin(phase)
    re_s = re_h * re_r - im_h * im_r - re_t
    im_s = re_h * im_r + im_h * re_r - im_t
    return model.gamma - jnp.sum(jnp.sqrt(re_s ** 2 + im_s ** 2), axis=-1)


if __name__ == "__main__":
    num_entities = 64
    num_relations = 16
    embedding_dim = 32
    gamma = 12.0
    batch = 10          # deliberately not a multiple of 8: exercises index padding

    key = jax.random.PRNGKey(0)
    k_model, k_h, k_r, k_t = jax.random.split(key, 4)

    model = RotatEModelJAX(num_entities, num_relations, embedding_dim, gamma,
                           key=k_model)

    h_idx = jax.random.randint(k_h, (batch,), 0, num_entities, dtype=jnp.int32)
    r_idx = jax.random.randint(k_r, (batch,), 0, num_relations, dtype=jnp.int32)
    t_idx = jax.random.randint(k_t, (batch,), 0, num_entities, dtype=jnp.int32)

    out = jax.block_until_ready(model(h_idx, r_idx, t_idx))
    assert out.shape == (batch,), out.shape

    # Tight check vs a reference that uses the same bf16-stored tables.
    ref_q = jax.block_until_ready(_reference_quantized(model, h_idx, r_idx, t_idx))
    assert jnp.allclose(out, ref_q, atol=5e-3, rtol=1e-4), (out, ref_q)

    # Loose check vs the f32 PyTorch-equivalent (bf16 table storage is the
    # accepted precision tradeoff).
    ref = jax.block_until_ready(_reference_f32(model, h_idx, r_idx, t_idx))
    assert jnp.allclose(out, ref, atol=1.0, rtol=2e-2), (out, ref)

    print("KERNEL_OK")
</pallas_src>

<mosaic_0001>
module attributes {stable_mosaic.version = 11 : i64} {
  func.func @_rotate_fused_kernel(%arg0: i32, %arg1: memref<16x1xi32, #tpu.memory_space<vmem>>, %arg2: memref<16x128xbf16, #tpu.memory_space<vmem>>, %arg3: memref<16x128xbf16, #tpu.memory_space<vmem>>, %arg4: memref<16x128xbf16, #tpu.memory_space<vmem>>, %arg5: memref<16x128xbf16, #tpu.memory_space<vmem>>, %arg6: memref<128x128xbf16, #tpu.memory_space<vmem>>, %arg7: memref<128x128xbf16, #tpu.memory_space<vmem>>, %arg8: memref<1x16xf32, #tpu.memory_space<vmem>>) attributes {dimension_semantics = [#tpu.dimension_semantics<parallel>], iteration_bounds = array<i64: 1>, scalar_prefetch = 0 : i64, scratch_operands = 0 : i64, tpu.core_type = #tpu.core_type<tc>, window_params = [{transform_indices = @transform_0, window_bounds = array<i64: 16, 1>}, {transform_indices = @transform_1, window_bounds = array<i64: 16, 128>}, {transform_indices = @transform_2, window_bounds = array<i64: 16, 128>}, {transform_indices = @transform_3, window_bounds = array<i64: 16, 128>}, {transform_indices = @transform_4, window_bounds = array<i64: 16, 128>}, {pipeline_mode = #tpu.pipeline_mode<synchronous>, transform_indices = @transform_5, window_bounds = array<i64: 128, 128>}, {pipeline_mode = #tpu.pipeline_mode<synchronous>, transform_indices = @transform_6, window_bounds = array<i64: 128, 128>}, {transform_indices = @transform_7, window_bounds = array<i64: 1, 16>}]} {
    %c0 = arith.constant 0 : index
    %c0_0 = arith.constant 0 : index
    %0 = vector.load %arg2[%c0, %c0_0] : memref<16x128xbf16, #tpu.memory_space<vmem>>, vector<16x128xbf16>
    %1 = arith.extf %0 : vector<16x128xbf16> to vector<16x128xf32>
    %c0_1 = arith.constant 0 : index
    %c0_2 = arith.constant 0 : index
    %2 = vector.load %arg3[%c0_1, %c0_2] : memref<16x128xbf16, #tpu.memory_space<vmem>>, vector<16x128xbf16>
    %3 = arith.extf %2 : vector<16x128xbf16> to vector<16x128xf32>
    %c0_3 = arith.constant 0 : index
    %c0_4 = arith.constant 0 : index
    %4 = vector.load %arg4[%c0_3, %c0_4] : memref<16x128xbf16, #tpu.memory_space<vmem>>, vector<16x128xbf16>
    %5 = arith.extf %4 : vector<16x128xbf16> to vector<16x128xf32>
    %c0_5 = arith.constant 0 : index
    %c0_6 = arith.constant 0 : index
    %6 = vector.load %arg5[%c0_5, %c0_6] : memref<16x128xbf16, #tpu.memory_space<vmem>>, vector<16x128xbf16>
    %7 = arith.extf %6 : vector<16x128xbf16> to vector<16x128xf32>
    %8 = tpu.iota {dimensions = array<i32: 1>} : vector<16x128xi32>
    %c0_7 = arith.constant 0 : index
    %c0_8 = arith.constant 0 : index
    %9 = vector.load %arg1[%c0_7, %c0_8] : memref<16x1xi32, #tpu.memory_space<vmem>>, vector<16x1xi32>
    %10 = vector.broadcast %9 : vector<16x1xi32> to vector<16x128xi32>
    %11 = arith.cmpi eq, %8, %10 : vector<16x128xi32>
    %12 = arith.extui %11 : vector<16x128xi1> to vector<16x128xi32>
    %13 = arith.sitofp %12 : vector<16x128xi32> to vector<16x128xf32>
    %14 = arith.truncf %13 : vector<16x128xf32> to vector<16x128xbf16>
    %c0_9 = arith.constant 0 : index
    %c0_10 = arith.constant 0 : index
    %15 = vector.load %arg6[%c0_9, %c0_10] : memref<128x128xbf16, #tpu.memory_space<vmem>>, vector<128x128xbf16>
    %cst = arith.constant dense<0.000000e+00> : vector<16x128xf32>
    %16 = tpu.matmul %14, %15, %cst {dimension_numbers = #tpu.dot_dimension_numbers<[1], [0], [0], [1], [0, 0, 1, 1], [], []>} : vector<16x128xbf16>, vector<128x128xbf16>, vector<16x128xf32> -> vector<16x128xf32>
    %c0_11 = arith.constant 0 : index
    %c0_12 = arith.constant 0 : index
    %17 = vector.load %arg7[%c0_11, %c0_12] : memref<128x128xbf16, #tpu.memory_space<vmem>>, vector<128x128xbf16>
    %cst_13 = arith.constant dense<0.000000e+00> : vector<16x128xf32>
    %18 = tpu.matmul %14, %17, %cst_13 {dimension_numbers = #tpu.dot_dimension_numbers<[1], [0], [0], [1], [0, 0, 1, 1], [], []>} : vector<16x128xbf16>, vector<128x128xbf16>, vector<16x128xf32> -> vector<16x128xf32>
    %19 = arith.mulf %1, %16 : vector<16x128xf32>
    %20 = arith.mulf %3, %18 : vector<16x128xf32>
    %21 = arith.subf %19, %20 : vector<16x128xf32>
    %22 = arith.subf %21, %5 : vector<16x128xf32>
    %23 = arith.mulf %1, %18 : vector<16x128xf32>
    %24 = arith.mulf %3, %16 : vector<16x128xf32>
    %25 = arith.addf %23, %24 : vector<16x128xf32>
    %26 = arith.subf %25, %7 : vector<16x128xf32>
    %27 = arith.mulf %22, %22 : vector<16x128xf32>
    %28 = arith.mulf %26, %26 : vector<16x128xf32>
    %29 = arith.addf %27, %28 : vector<16x128xf32>
    %30 = math.sqrt %29 : vector<16x128xf32>
    %cst_14 = arith.constant dense<0.000000e+00> : vector<16xf32>
    %31 = vector.multi_reduction <add>, %30, %cst_14 [1] : vector<16x128xf32> to vector<16xf32>
    %cst_15 = arith.constant 1.200000e+01 : f32
    %32 = vector.broadcast %cst_15 : f32 to vector<16xf32>
    %33 = arith.subf %32, %31 : vector<16xf32>
    %34 = vector.shape_cast %33 : vector<16xf32> to vector<1x16xf32>
    %c0_16 = arith.constant 0 : index
    %c0_17 = arith.constant 0 : index
    %35 = vector.load %arg8[%c0_16, %c0_17] : memref<1x16xf32, #tpu.memory_space<vmem>>, vector<1x16xf32>
    tpu.vector_store %arg8[%c0_16, %c0_17], %34 {strides = array<i32>} : memref<1x16xf32, #tpu.memory_space<vmem>>, vector<1x16xf32>,
    return
  }
  func.func @transform_0(%arg0: i32) -> (i32, i32) {
    %c0_i32 = arith.constant 0 : i32
    %c0_i32_0 = arith.constant 0 : i32
    return %arg0, %c0_i32 : i32, i32
  }
  func.func @transform_1(%arg0: i32) -> (i32, i32) {
    %c0_i32 = arith.constant 0 : i32
    %c0_i32_0 = arith.constant 0 : i32
    return %arg0, %c0_i32 : i32, i32
  }
  func.func @transform_2(%arg0: i32) -> (i32, i32) {
    %c0_i32 = arith.constant 0 : i32
    %c0_i32_0 = arith.constant 0 : i32
    return %arg0, %c0_i32 : i32, i32
  }
  func.func @transform_3(%arg0: i32) -> (i32, i32) {
    %c0_i32 = arith.constant 0 : i32
    %c0_i32_0 = arith.constant 0 : i32
    return %arg0, %c0_i32 : i32, i32
  }
  func.func @transform_4(%arg0: i32) -> (i32, i32) {
    %c0_i32 = arith.constant 0 : i32
    %c0_i32_0 = arith.constant 0 : i32
    return %arg0, %c0_i32 : i32, i32
  }
  func.func @transform_5(%arg0: i32) -> (i32, i32) {
    %c0_i32 = arith.constant 0 : i32
    %c0_i32_0 = arith.constant 0 : i32
    %c0_i32_1 = arith.constant 0 : i32
    return %c0_i32, %c0_i32_0 : i32, i32
  }
  func.func @transform_6(%arg0: i32) -> (i32, i32) {
    %c0_i32 = arith.constant 0 : i32
    %c0_i32_0 = arith.constant 0 : i32
    %c0_i32_1 = arith.constant 0 : i32
    return %c0_i32, %c0_i32_0 : i32, i32
  }
  func.func @transform_7(%arg0: i32) -> (i32, i32) {
    %c0_i32 = arith.constant 0 : i32
    %c0_i32_0 = arith.constant 0 : i32
    return %c0_i32, %arg0 : i32, i32
  }
}

</mosaic_0001>

<bundles_post_ra>
// kernel: tpu_custom_call.1
= control target key start
LH: loop header
LB: loop body
LE: loop exit
PB: predicated region body
PF: predicated region fallthrough
CT: control target
= control target key end

     0   :  { %12 = vsyncpa [#allocation3], 0  ;;  %s684_s0 = inlined_call_operand.vmem [shape: s32[16,1], index: 0, kind: input, shape index: {}]   ;;  %s685_s1 = inlined_call_operand.vmem [shape: bf16[16,128], index: 1, kind: input, shape index: {}]   ;;  %s686_s2 = inlined_call_operand.vmem [shape: bf16[16,128], index: 2, kind: input, shape index: {}]   ;;  %s687_s3 = inlined_call_operand.hbm [shape: bf16[16,128], index: 3, kind: input, shape index: {}]   ;;  %s688_s4 = inlined_call_operand.vmem [shape: bf16[16,128], index: 4, kind: input, shape index: {}]   ;;  %s689_s5 = inlined_call_operand.hbm [shape: bf16[128,128], index: 5, kind: input, shape index: {}]   ;;  %s690_s6 = inlined_call_operand.hbm [shape: bf16[128,128], index: 6, kind: input, shape index: {}]   ;;  %s691_s7 = inlined_call_operand.hbm [shape: f32[1,16], index: 7, kind: output, shape index: {}]  }
   0x1   :  { %13 = vsyncpa [#allocation6], 0 }
   0x2   :  { %14 = vsyncpa [#allocation4], 0  ;;  %s599_s24 = smov [#allocation5]   ;;  %s600_s26 = smov [#allocation2]  }
   0x3   :  { %s40_s25 = sshll.u32 %s599_s24, 4  ;;  %s26_s27 = sshll.u32 %s600_s26, 4  ;;  %s41_s25 = int_to_ptr.vmem [resolvable:$true] %s40_s25  ;;  %s27_s27 = int_to_ptr.vmem [resolvable:$true] %s26_s27 }
   0x4   :  { %s521_s28 = scalar_lea.vmem %s41_s25, 1024  ;;  %p526_p1 = scmp.lt.s32.totalorder %s41_s25, %s41_s25 }
   0x5   :  { %p522_p0 = scmp.ne.s32.totalorder %s41_s25, %s521_s28  ;;  %p527_p2 = scmp.lt.s32.totalorder %s521_s28, %s521_s28 }
   0x7   :  { %p528_p3 = por %p527_p2, %p526_p1 }
   0x9   :  { %p529_p4 = pnand %p528_p3, %p522_p0 }
   0xb   :  { %532 = shalt.err (!%p529_p4)
}
   0xc   :  { %s601_s29 = smov 64   ;;  %s602_s30 = smov 4  }
   0xd   :  { %46 = dma.hbm_to_vmem [thread:$0]  %s689_s5, 1024, %s41_s25, [#allocation6], %s601_s29, %s601_s29, %s602_s30  }
   0xe   :  { %s541_s10 = scalar_lea.vmem %s27_s27, 128  ;;  %p546_p6 = scmp.lt.s32.totalorder %s27_s27, %s27_s27 }
   0xf   :  { %p542_p5 = scmp.ne.s32.totalorder %s27_s27, %s541_s10  ;;  %p547_p7 = scmp.lt.s32.totalorder %s541_s10, %s541_s10 }
  0x11   :  { %p548_p8 = por %p547_p7, %p546_p6 }
  0x13   :  { %p549_p9 = pnand %p548_p8, %p542_p5 }
  0x15   :  { %552 = shalt.err (!%p549_p9)
}
  0x16   :  { %32 = dma.hbm_to_vmem [thread:$0]  %s687_s3, 128, %s27_s27, [#allocation3], %s601_s29, %s601_s29, %s602_s30  }
  0x17   :  { %s603_s13 = smov [#allocation7]  }
  0x18   :  { %s52_s14 = sshll.u32 %s603_s13, 4  ;;  %s53_s14 = int_to_ptr.vmem [resolvable:$true] %s52_s14 }
  0x19   :  { %s561_s15 = scalar_lea.vmem %s53_s14, 1024  ;;  %p566_p11 = scmp.lt.s32.totalorder %s53_s14, %s53_s14 }
  0x1a   :  { %p562_p10 = scmp.ne.s32.totalorder %s53_s14, %s561_s15  ;;  %p567_p12 = scmp.lt.s32.totalorder %s561_s15, %s561_s15 }
  0x1c   :  { %p568_p13 = por %p567_p12, %p566_p11 }
  0x1e   :  { %p569_p0 = pnand %p568_p13, %p562_p10 }
  0x20   :  { %572 = shalt.err (!%p569_p0)
}
  0x21   :  { %58 = dma.hbm_to_vmem [thread:$0]  %s690_s6, 1024, %s53_s14, [#allocation6], %s601_s29, %s601_s29, %s602_s30  }
  0x22   :  { %593 = dma.done.wait [#allocation3], 128  }
  0x23   :  { %594 = vsyncadd [#allocation3], 4294967168 }
  0x24   :  { %595 = dma.done.wait [#allocation6], 2048  }
  0x25   :  { %596 = vsyncadd [#allocation6], 4294965248  ;;  %v604_v0 = vmov 0   ;;  %v605_v1 = vmov 0.0   ;;  %v87_v2 = vld [vmem:[%s684_s0] sm:$0xff]  ;;  %v88_v3 = vld [vmem:[%s684_s0 + $0x8] sm:$0xff]  ;;  %v85_v20 = vlaneseq }
  0x26   :  { %492 = vset.pattern.permute.xlu0 %v604_v0  ;;  %442 = vmatprep.subr.bf16.mxu0 %v605_v1  ;;  %v493_v4 = vld [vmem:[#allocation5 + $0x38] sm:$0xff]   ;;  %vm606_vm0 = vmmov 0   ;;  %v495_v6 = vld [vmem:[#allocation5 + $0x30] sm:$0xff]   ;;  %v497_v8 = vld [vmem:[#allocation5 + $0x28] sm:$0xff]   ;;  %v607_v24 = vmov 1.0|1.0  }
  0x27   :  { %462 = vmatprep.subr.bf16.mxu1 %v605_v1  ;;  %90 = vperm.xlu0 %492, %v87_v2   ;;  %v494_v5 = vld [vmem:[#allocation7 + $0x38] sm:$0xff]   ;;  %v496_v7 = vld [vmem:[#allocation7 + $0x30] sm:$0xff]   ;;  %v498_v9 = vld [vmem:[#allocation7 + $0x28] sm:$0xff]   ;;  %v665_v22 = vand.u32 127, %v85_v20  ;;  %vm365_vm8 = vcmask 130112   ;;  %vm368_vm9 = vcmask 122880  }
  0x28   :  { %458 = vmatprep.mubr.msk.bf16.mxu0 %vm606_vm0, %v605_v1  ;;  %478 = vmatprep.mubr.msk.bf16.mxu1 %vm606_vm0, %v605_v1  ;;  %v499_v10 = vld [vmem:[#allocation5 + $0x20] sm:$0xff]   ;;  %v501_v12 = vld [vmem:[#allocation5 + $0x18] sm:$0xff]   ;;  %v503_v14 = vld [vmem:[#allocation5 + $0x10] sm:$0xff]  }
  0x29   :  { %443 = vmatpush3.bf16.msra.mxu0 %v493_v4  ;;  %463 = vmatpush3.bf16.msra.mxu1 %v494_v5  ;;  %v500_v11 = vld [vmem:[#allocation7 + $0x20] sm:$0xff]   ;;  %v502_v13 = vld [vmem:[#allocation7 + $0x18] sm:$0xff]   ;;  %v504_v15 = vld [vmem:[#allocation7 + $0x10] sm:$0xff]  }
  0x2a   :  { %444 = vmatprep.subr.bf16.mxu0 %v605_v1  ;;  %464 = vmatprep.subr.bf16.mxu1 %v605_v1  ;;  %v505_v16 = vld [vmem:[#allocation5 + $0x8] sm:$0xff]   ;;  %v507_v18 = vld [vmem:[#allocation5] sm:$0xff]   ;;  %v409_v25 = vld [vmem:[%s685_s1] sm:$0xff]   ;;  %s608_s1 = smov [#allocation8]  }
  0x2b   :  { %93 = vperm.xlu0 %492, %v88_v3   ;;  %v506_v17 = vld [vmem:[#allocation7 + $0x8] sm:$0xff]   ;;  %v508_v19 = vld [vmem:[#allocation7] sm:$0xff]   ;;  %v413_v26 = vld [vmem:[%s686_s2] sm:$0xff]   ;;  %v410_v27 = vunpack.c.l.bf16 %v409_v25  ;;  %v411_v35 = vunpack.c.h.bf16 %v409_v25  ;;  %s376_s2 = sshll.u32 %s608_s1, 4  ;;  %s377_s2 = int_to_ptr.vmem [resolvable:$true] %s376_s2 }
  0x2c   :  { %v414_v28 = vunpack.c.l.bf16 %v413_v26  ;;  %v417_v29 = vld [vmem:[#allocation2] sm:$0xff]   ;;  %v421_v30 = vld [vmem:[%s688_s4] sm:$0xff]   ;;  %v415_v36 = vunpack.c.h.bf16 %v413_v26  ;;  %s573_s4 = scalar_lea.vmem %s377_s2, 16  ;;  %s577_s24 = scalar_lea.vmem %s377_s2, 32 }
  0x2d   :  { %445 = vmatpush3.bf16.msra.mxu0 %v495_v6  ;;  %465 = vmatpush3.bf16.msra.mxu1 %v496_v7  ;;  %v418_v32 = vunpack.c.l.bf16 %v417_v29  ;;  %v422_v33 = vunpack.c.l.bf16 %v421_v30  ;;  %v419_v51 = vunpack.c.h.bf16 %v417_v29  ;;  %v423_v52 = vunpack.c.h.bf16 %v421_v30  ;;  %p574_p1 = scmp.ne.s32.totalorder %s377_s2, %s573_s4  ;;  %p578_p2 = scmp.lt.s32.totalorder %s377_s2, %s377_s2 }
  0x2e   :  { %446 = vmatprep.subr.bf16.mxu0 %v605_v1  ;;  %466 = vmatprep.subr.bf16.mxu1 %v605_v1  ;;  %p579_p3 = scmp.lt.s32.totalorder %s577_s24, %s573_s4 }
  0x30   :  { %p580_p4 = por %p579_p3, %p578_p2 }
  0x31   :  { %447 = vmatpush3.bf16.msra.mxu0 %v497_v8  ;;  %467 = vmatpush3.bf16.msra.mxu1 %v498_v9 }
  0x32   :  { %448 = vmatprep.subr.bf16.mxu0 %v605_v1  ;;  %468 = vmatprep.subr.bf16.mxu1 %v605_v1  ;;  %p581_p5 = pnand %p580_p4, %p574_p1 }
  0x35   :  { %449 = vmatpush3.bf16.msra.mxu0 %v499_v10  ;;  %469 = vmatpush3.bf16.msra.mxu1 %v500_v11 }
  0x36   :  { %450 = vmatprep.subr.bf16.mxu0 %v605_v1  ;;  %470 = vmatprep.subr.bf16.mxu1 %v605_v1 }
  0x39   :  { %451 = vmatpush3.bf16.msra.mxu0 %v501_v12  ;;  %471 = vmatpush3.bf16.msra.mxu1 %v502_v13  ;;  %v357_v13 = vshrl.u32 %v85_v20, 7 }
  0x3a   :  { %452 = vmatprep.subr.bf16.mxu0 %v605_v1  ;;  %472 = vmatprep.subr.bf16.mxu1 %v605_v1 }
  0x3d   :  { %453 = vmatpush3.bf16.msra.mxu0 %v503_v14  ;;  %473 = vmatpush3.bf16.msra.mxu1 %v504_v15  ;;  %v360_v15 = vadd.s32 4294967288, %v665_v22 }
  0x3e   :  { %454 = vmatprep.subr.bf16.mxu0 %v605_v1  ;;  %474 = vmatprep.subr.bf16.mxu1 %v605_v1 }
  0x41   :  { %455 = vmatpush3.bf16.msra.mxu0 %v505_v16  ;;  %475 = vmatpush3.bf16.msra.mxu1 %v506_v17  ;;  %v358_v16 = vsub.s32 %v665_v22, %v357_v13 }
  0x42   :  { %456 = vmatprep.subr.bf16.mxu0 %v605_v1  ;;  %476 = vmatprep.subr.bf16.mxu1 %v605_v1 }
  0x45   :  { %457 = vmatpush3.bf16.msra.mxu0 %v507_v18  ;;  %477 = vmatpush3.bf16.msra.mxu1 %v508_v19  ;;  %v363_v18 = vsub.s32 %v360_v15, %v357_v13 }
  0xa2   :  { %v91_v21 = vpop.permute.xlu0 %90 }
  0xa3   :  { %vm95_vm1 = vcmp.eq.s32.totalorder %v665_v22, %v91_v21 }
  0xa6   :  { %v94_v23 = vpop.permute.xlu0 %93 }
  0xa7   :  { %vm96_vm2 = vcmp.eq.s32.totalorder %v665_v22, %v94_v23 }
  0xa8   :  { %vm396_vm3 = vmpackc.low %vm96_vm2, %vm95_vm1 }
  0xa9   :  { %459 = vmatmul.mubr.msk.bf16.vlgmr.msra.gmra.mxu0 %vm396_vm3, %v607_v24  ;;  %479 = vmatmul.mubr.msk.bf16.vlgmr.msra.gmra.mxu1 %vm396_vm3, %v607_v24 }
 0x169   :  { %v200_v31 = vpop.f32.mrf.mxu0  ;;  %v305_v34 = vpop.f32.mrf.mxu1 }
 0x16a   :  { %v312_v37 = vmul.f32 %v410_v27, %v200_v31  ;;  %v322_v38 = vmul.f32 %v414_v28, %v200_v31  ;;  %v314_v39 = vmul.f32 %v414_v28, %v305_v34  ;;  %v320_v40 = vmul.f32 %v410_v27, %v305_v34 }
 0x16b   :  { %v460_v41 = vpop.f32.mrf.mxu0  ;;  %v480_v42 = vpop.f32.mrf.mxu1 }
 0x16c   :  { %v316_v43 = vsub.f32 %v312_v37, %v314_v39  ;;  %v324_v44 = vadd.f32 %v322_v38, %v320_v40 }
 0x16d   :  { %v203_v45 = vpop.f32.mrf.mxu0  ;;  %v308_v46 = vpop.f32.mrf.mxu1 }
 0x16e   :  { %v318_v47 = vsub.f32 %v316_v43, %v418_v32  ;;  %v326_v48 = vsub.f32 %v324_v44, %v422_v33  ;;  %v313_v49 = vmul.f32 %v411_v35, %v203_v45  ;;  %v323_v50 = vmul.f32 %v415_v36, %v203_v45 }
 0x16f   :  { %v315_v53 = vmul.f32 %v415_v36, %v308_v46  ;;  %v321_v54 = vmul.f32 %v411_v35, %v308_v46  ;;  %v461_v55 = vpop.f32.mrf.mxu0  ;;  %v481_v56 = vpop.f32.mrf.mxu1 }
 0x170   :  { %v328_v57 = vmul.f32 %v318_v47, %v318_v47  ;;  %v330_v58 = vmul.f32 %v326_v48, %v326_v48 }
 0x171   :  { %v317_v59 = vsub.f32 %v313_v49, %v315_v53  ;;  %v325_v60 = vadd.f32 %v323_v50, %v321_v54 }
 0x172   :  { %v332_v61 = vadd.f32 %v330_v58, %v328_v57 }
 0x173   :  { %v319_v62 = vsub.f32 %v317_v59, %v419_v51  ;;  %v327_v63 = vsub.f32 %v325_v60, %v423_v52 }
 0x174   :  { %509 = vrsqrt.f32 %v332_v61  ;;  %vm336_vm4 = vcmp.eq.f32.partialorder %v332_v61, inf  ;;  %v339_v5 = vand.u32 2147483648, %v332_v61  ;;  %vm338_vm5 = vcmp.eq.f32.partialorder %v332_v61, 0.0 }
 0x175   :  { %v329_v0 = vmul.f32 %v319_v62, %v319_v62  ;;  %v331_v1 = vmul.f32 %v327_v63, %v327_v63 }
 0x177   :  { %v333_v2 = vadd.f32 %v331_v1, %v329_v0 }
 0x179   :  { %511 = vrsqrt.f32 %v333_v2  ;;  %vm343_vm6 = vcmp.eq.f32.partialorder %v333_v2, inf  ;;  %v346_v10 = vand.u32 2147483648, %v333_v2  ;;  %vm345_vm7 = vcmp.eq.f32.partialorder %v333_v2, 0.0 }
 0x181   :  { %v510_v3 = vpop.eup %509 }
 0x182   :  { %v335_v4 = vmul.f32 %v510_v3, %v332_v61 }
 0x184   :  { %v337_v6 = vsel %vm336_vm4, %v332_v61, %v335_v4 }
 0x185   :  { %v340_v7 = vsel %vm338_vm5, %v339_v5, %v337_v6 }
 0x186   :  { %v512_v8 = vpop.eup %511  ;;  %348 = vadd.xlane.f32.xlu1 %v340_v7 }
 0x187   :  { %v342_v9 = vmul.f32 %v512_v8, %v333_v2 }
 0x189   :  { %v344_v11 = vsel %vm343_vm6, %v333_v2, %v342_v9 }
 0x18a   :  { %v347_v12 = vsel %vm345_vm7, %v346_v10, %v344_v11 }
 0x18b   :  { %350 = vadd.xlane.f32.xlu1 %v347_v12 }
 0x20f   :  { %v349_v14 = vpop.xlane.xlu1 %348 }
 0x210   :  { %v352_v17 = vsub.f32 12.0, %v349_v14 }
 0x212   :  { %v359_v23 = vrot.slane %v352_v17, %v358_v16 }
 0x214   :  { %v351_v19 = vpop.xlane.xlu1 %350 }
 0x215   :  { %v353_v21 = vsub.f32 12.0, %v351_v19 }
 0x217   :  { %v364_v24 = vrot.slane %v353_v21, %v363_v18 }
 0x219   :  { %v366_v25 = vsel %vm365_vm8, %v364_v24, %v359_v23 }
 0x21a   :  { %369 = vst.msk [vmem:[#allocation8] sm:$0x1] %vm368_vm9, %v366_v25 }
 0x21b   :  { %584 = shalt.err (!%p581_p5)
}
 0x21c   :  { %379 = dma.vmem_to_hbm [thread:$0]  %s377_s2, 16, %s691_s7, [#allocation4]  }
 0x21d   :  { %597 = dma.done.wait [#allocation4], 16  }
 0x21e   :  { %598 = vsyncadd [#allocation4], 4294967280 }
 0x21f   :  { %383 = vsyncpa [#allocation3], 1 }
 0x220   :  { %384 = vsyncpa [#allocation6], 1 }
 0x221   :  { %385 = vsyncpa [#allocation4], 1 }

</bundles_post_ra>
